<compile_context>
chip_gen: v7x
topology: tpu7x:2x2x1
jax: 0.10.0
libtpu: 0.0.40
codegen_flags: <defaults>
</compile_context>

<pallas_src>
import functools
import math

import jax
import jax.numpy as jnp
from jax import lax
from jax.experimental import pallas as pl
from jax.experimental.pallas import tpu as pltpu


def _tokenizer_kernel(xin_ref, m_num_ref, m_cat_ref, bias_ref, out_ref,
                      *, d_num1, n_cat):
    """Lane-dense token assembly for one batch tile.

    xin_ref  : [TB, d_num1 + n_cat] f32  (ones | x_num | cat idx(+offsets) as f32)
    m_num_ref: [d_num1 + n_cat, n_tokens*D] f32  (weight block-diagonal, idx rows zero)
    m_cat_ref: [n_emb, n_tokens*D] f32  (embedding row scattered to its token's lanes)
    bias_ref : [1, n_tokens*D] f32      (zero CLS bias row folded in)
    out_ref  : [TB, n_tokens*D] f32     lane-dense output tile
    """
    n_emb = m_cat_ref.shape[0]
    xin = xin_ref[...]

    # --- CLS + numerical tokens: one tiny block-structured MXU GEMM that lands
    #     directly in the lane-dense layout (index columns hit zero rows). ---
    out2d = jnp.dot(xin, m_num_ref[...],
                    preferred_element_type=jnp.float32,
                    precision=lax.Precision.HIGHEST)

    # --- categorical tokens: multi-hot over the *global* embedding index
    #     (per-column ranges are disjoint -> exactly one 1 per column), then one
    #     GEMM into the block-structured, lane-dense embedding table. ---
    idx = xin[:, d_num1:].astype(jnp.int32)                    # [TB, n_cat] exact ints
    iota = lax.broadcasted_iota(jnp.int32, (1, n_emb), 1)      # [1, n_emb]
    hot = (iota == idx[:, 0:1]).astype(jnp.float32)
    for c in range(1, n_cat):                                  # static, tiny
        hot = hot + (iota == idx[:, c:c + 1]).astype(jnp.float32)
    out2d = out2d + jnp.dot(hot, m_cat_ref[...],
                            preferred_element_type=jnp.float32,
                            precision=lax.Precision.HIGHEST)

    # --- bias add + single lane-dense full-tile store ---
    out_ref[...] = out2d + bias_ref[...]


def _round_up(x, m):
    return ((x + m - 1) // m) * m


def tokenizer_forward(x_num, x_cat, category_offsets, weight, cat_embeddings, bias,
                      *, batch_tile=4096):
    """JAX wrapper: tiny host-side prep + one batch-gridded pallas_call."""
    B = x_num.shape[0]
    d_num1, D = weight.shape                 # d_numerical + 1
    n_cat = x_cat.shape[1]
    n_emb = cat_embeddings.shape[0]
    n_tokens = d_num1 + n_cat
    N = n_tokens * D
    f32 = jnp.float32

    weight = weight.astype(f32)
    cat_embeddings = cat_embeddings.astype(f32)
    bias = bias.astype(f32)

    # ---- host-side prep (tiny, fused by XLA) --------------------------------
    # One packed per-row operand: ones column | numerical values | offset-folded
    # categorical indices stored as exact small-int f32 -> a single input DMA.
    idx = x_cat.astype(jnp.int32) + category_offsets.astype(jnp.int32)[None, :]
    xin = jnp.concatenate(
        [jnp.ones((B, 1), f32), x_num.astype(f32), idx.astype(f32)], axis=1)

    # Block-structured matrices that emit the lane-dense [n_tokens*D] row directly.
    tok = jnp.arange(n_tokens, dtype=jnp.int32)
    eye_num = (tok[None, :] == jnp.arange(d_num1, dtype=jnp.int32)[:, None]).astype(f32)
    m_num = jnp.concatenate(
        [(eye_num[:, :, None] * weight[:, None, :]).reshape(d_num1, N),
         jnp.zeros((n_cat, N), f32)], axis=0)                       # [d_num1+n_cat, N]

    offs = category_offsets.astype(jnp.int32)
    col_of = jnp.sum(jnp.arange(n_emb, dtype=jnp.int32)[:, None] >= offs[None, :],
                     axis=1) - 1                                    # owning column per row
    eye_cat = (tok[None, :] == (d_num1 + col_of)[:, None]).astype(f32)
    m_cat = (eye_cat[:, :, None] * cat_embeddings[:, None, :]).reshape(n_emb, N)

    bias_flat = jnp.concatenate([jnp.zeros((1, D), f32), bias], axis=0).reshape(1, N)

    # ---- batch tile / grid ---------------------------------------------------
    # <=4096 rows keeps double-buffered tiles (~17 MB) under the 32 MiB scoped
    # VMEM default on every generation (incl. v7x's 64 MiB physical VMEM), and
    # clamping to round_up(cdiv(B,2),8) guarantees >=2 grid steps so
    # dimension_semantics=("parallel",) can use both v7x TensorCores.
    tb = min(batch_tile, max(8, _round_up(pl.cdiv(B, 2), 8)))
    grid = (pl.cdiv(B, tb),)

    kernel = functools.partial(_tokenizer_kernel, d_num1=d_num1, n_cat=n_cat)

    out2d = pl.pallas_call(
        kernel,
        out_shape=jax.ShapeDtypeStruct((B, N), f32),
        grid_spec=pltpu.PrefetchScalarGridSpec(
            num_scalar_prefetch=0,
            grid=grid,
            in_specs=[
                pl.BlockSpec((tb, d_num1 + n_cat), lambda b: (b, 0)),   # packed rows
                pl.BlockSpec((d_num1 + n_cat, N), lambda b: (0, 0)),    # m_num (resident)
                pl.BlockSpec((n_emb, N), lambda b: (0, 0)),             # m_cat (resident)
                pl.BlockSpec((1, N), lambda b: (0, 0)),                 # bias  (resident)
            ],
            out_specs=pl.BlockSpec((tb, N), lambda b: (b, 0)),
        ),
        compiler_params=pltpu.CompilerParams(dimension_semantics=("parallel",)),
    )(xin, m_num, m_cat, bias_flat)

    # Trailing-dim reshape back to [B, n_tokens, D] is metadata-only.
    return out2d.reshape(B, n_tokens, D)


def tokenizer_reference(x_num, x_cat, category_offsets, weight, cat_embeddings, bias):
    """Pure-JAX reference mirroring the PyTorch forward exactly."""
    B = x_num.shape[0]
    x_num_aug = jnp.concatenate([jnp.ones((B, 1), jnp.float32), x_num], axis=1)
    x = weight[None] * x_num_aug[:, :, None]
    cat = cat_embeddings[x_cat + category_offsets[None]]
    x = jnp.concatenate([x, cat], axis=1)
    bias_full = jnp.concatenate([jnp.zeros((1, bias.shape[1]), jnp.float32), bias], axis=0)
    return x + bias_full[None]


if __name__ == "__main__":
    # Small shapes consistent with the module; B=16 gives tb=8 -> a 2-step grid,
    # exercising the batch pipeline as well.
    B = 16
    d_numerical = 7
    categories = [3, 4, 5]
    d_token = 32
    n_cat = len(categories)
    d_bias = d_numerical + n_cat

    key = jax.random.PRNGKey(0)
    k_w, k_b, k_e, k_xn, k_xc = jax.random.split(key, 5)

    # kaiming_uniform_(a=sqrt(5)) on a 2D tensor -> U(-1/sqrt(fan_in), 1/sqrt(fan_in)),
    # fan_in = d_token for all three parameter tensors.
    bound = 1.0 / math.sqrt(d_token)
    weight = jax.random.uniform(k_w, (d_numerical + 1, d_token), jnp.float32, -bound, bound)
    bias = jax.random.uniform(k_b, (d_bias, d_token), jnp.float32, -bound, bound)
    cat_embeddings = jax.random.uniform(k_e, (sum(categories), d_token), jnp.float32,
                                        -bound, bound)
    category_offsets = jnp.array([0] + categories[:-1], jnp.int32).cumsum(0)

    x_num = jax.random.normal(k_xn, (B, d_numerical), jnp.float32)
    cat_cols = []
    for i, c in enumerate(categories):
        cat_cols.append(jax.random.randint(jax.random.fold_in(k_xc, i), (B,), 0, c))
    x_cat = jnp.stack(cat_cols, axis=1).astype(jnp.int32)

    out = tokenizer_forward(x_num, x_cat, category_offsets, weight, cat_embeddings, bias)
    out = jax.block_until_ready(out)

    ref = tokenizer_reference(x_num, x_cat, category_offsets, weight, cat_embeddings, bias)
    assert out.shape == (B, d_numerical + 1 + n_cat, d_token), out.shape
    assert jnp.allclose(out, ref, atol=1e-5, rtol=1e-5), float(jnp.max(jnp.abs(out - ref)))

    print("KERNEL_OK")
</pallas_src>

<mosaic_0001>
module attributes {stable_mosaic.version = 11 : i64} {
  func.func @_tokenizer_kernel(%arg0: i32, %arg1: memref<8x11xf32, #tpu.memory_space<vmem>>, %arg2: memref<11x352xf32, #tpu.memory_space<vmem>>, %arg3: memref<12x352xf32, #tpu.memory_space<vmem>>, %arg4: memref<1x352xf32, #tpu.memory_space<vmem>>, %arg5: memref<8x352xf32, #tpu.memory_space<vmem>>) attributes {dimension_semantics = [#tpu.dimension_semantics<parallel>], iteration_bounds = array<i64: 2>, scalar_prefetch = 0 : i64, scratch_operands = 0 : i64, tpu.core_type = #tpu.core_type<tc>, window_params = [{transform_indices = @transform_0, window_bounds = array<i64: 8, 11>}, {pipeline_mode = #tpu.pipeline_mode<synchronous>, transform_indices = @transform_1, window_bounds = array<i64: 11, 352>}, {pipeline_mode = #tpu.pipeline_mode<synchronous>, transform_indices = @transform_2, window_bounds = array<i64: 12, 352>}, {pipeline_mode = #tpu.pipeline_mode<synchronous>, transform_indices = @transform_3, window_bounds = array<i64: 1, 352>}, {transform_indices = @transform_4, window_bounds = array<i64: 8, 352>}]} {
    %c0 = arith.constant 0 : index
    %c0_0 = arith.constant 0 : index
    %0 = vector.load %arg1[%c0, %c0_0] : memref<8x11xf32, #tpu.memory_space<vmem>>, vector<8x11xf32>
    %c0_1 = arith.constant 0 : index
    %c0_2 = arith.constant 0 : index
    %1 = vector.load %arg2[%c0_1, %c0_2] : memref<11x352xf32, #tpu.memory_space<vmem>>, vector<11x352xf32>
    %cst = arith.constant dense<0.000000e+00> : vector<8x352xf32>
    %2 = tpu.matmul %0, %1, %cst {dimension_numbers = #tpu.dot_dimension_numbers<[1], [0], [0], [1], [0, 0, 1, 1], [], []>, precision = #tpu.contract_precision<fp32>} : vector<8x11xf32>, vector<11x352xf32>, vector<8x352xf32> -> vector<8x352xf32>
    %3 = vector.extract_strided_slice %0 {offsets = [0, 8], sizes = [8, 3], strides = [1, 1]} : vector<8x11xf32> to vector<8x3xf32>
    %4 = arith.fptosi %3 : vector<8x3xf32> to vector<8x3xi32>
    %5 = tpu.iota {dimensions = array<i32: 1>} : vector<1x12xi32>
    %6 = vector.extract_strided_slice %4 {offsets = [0, 0], sizes = [8, 1], strides = [1, 1]} : vector<8x3xi32> to vector<8x1xi32>
    %7 = vector.broadcast %5 : vector<1x12xi32> to vector<8x12xi32>
    %8 = vector.broadcast %6 : vector<8x1xi32> to vector<8x12xi32>
    %9 = arith.cmpi eq, %7, %8 : vector<8x12xi32>
    %10 = arith.extui %9 : vector<8x12xi1> to vector<8x12xi32>
    %11 = arith.sitofp %10 : vector<8x12xi32> to vector<8x12xf32>
    %12 = vector.extract_strided_slice %4 {offsets = [0, 1], sizes = [8, 1], strides = [1, 1]} : vector<8x3xi32> to vector<8x1xi32>
    %13 = vector.broadcast %5 : vector<1x12xi32> to vector<8x12xi32>
    %14 = vector.broadcast %12 : vector<8x1xi32> to vector<8x12xi32>
    %15 = arith.cmpi eq, %13, %14 : vector<8x12xi32>
    %16 = arith.extui %15 : vector<8x12xi1> to vector<8x12xi32>
    %17 = arith.sitofp %16 : vector<8x12xi32> to vector<8x12xf32>
    %18 = arith.addf %11, %17 : vector<8x12xf32>
    %19 = vector.extract_strided_slice %4 {offsets = [0, 2], sizes = [8, 1], strides = [1, 1]} : vector<8x3xi32> to vector<8x1xi32>
    %20 = vector.broadcast %5 : vector<1x12xi32> to vector<8x12xi32>
    %21 = vector.broadcast %19 : vector<8x1xi32> to vector<8x12xi32>
    %22 = arith.cmpi eq, %20, %21 : vector<8x12xi32>
    %23 = arith.extui %22 : vector<8x12xi1> to vector<8x12xi32>
    %24 = arith.sitofp %23 : vector<8x12xi32> to vector<8x12xf32>
    %25 = arith.addf %18, %24 : vector<8x12xf32>
    %c0_3 = arith.constant 0 : index
    %c0_4 = arith.constant 0 : index
    %26 = vector.load %arg3[%c0_3, %c0_4] : memref<12x352xf32, #tpu.memory_space<vmem>>, vector<12x352xf32>
    %cst_5 = arith.constant dense<0.000000e+00> : vector<8x352xf32>
    %27 = tpu.matmul %25, %26, %cst_5 {dimension_numbers = #tpu.dot_dimension_numbers<[1], [0], [0], [1], [0, 0, 1, 1], [], []>, precision = #tpu.contract_precision<fp32>} : vector<8x12xf32>, vector<12x352xf32>, vector<8x352xf32> -> vector<8x352xf32>
    %28 = arith.addf %2, %27 : vector<8x352xf32>
    %c0_6 = arith.constant 0 : index
    %c0_7 = arith.constant 0 : index
    %29 = vector.load %arg4[%c0_6, %c0_7] : memref<1x352xf32, #tpu.memory_space<vmem>>, vector<1x352xf32>
    %30 = vector.broadcast %29 : vector<1x352xf32> to vector<8x352xf32>
    %31 = arith.addf %28, %30 : vector<8x352xf32>
    %c0_8 = arith.constant 0 : index
    %c0_9 = arith.constant 0 : index
    %32 = vector.load %arg5[%c0_8, %c0_9] : memref<8x352xf32, #tpu.memory_space<vmem>>, vector<8x352xf32>
    tpu.vector_store %arg5[%c0_8, %c0_9], %31 {strides = array<i32>} : memref<8x352xf32, #tpu.memory_space<vmem>>, vector<8x352xf32>,
    return
  }
  func.func @transform_0(%arg0: i32) -> (i32, i32) {
    %c0_i32 = arith.constant 0 : i32
    %c0_i32_0 = arith.constant 0 : i32
    return %arg0, %c0_i32 : i32, i32
  }
  func.func @transform_1(%arg0: i32) -> (i32, i32) {
    %c0_i32 = arith.constant 0 : i32
    %c0_i32_0 = arith.constant 0 : i32
    %c0_i32_1 = arith.constant 0 : i32
    return %c0_i32, %c0_i32_0 : i32, i32
  }
  func.func @transform_2(%arg0: i32) -> (i32, i32) {
    %c0_i32 = arith.constant 0 : i32
    %c0_i32_0 = arith.constant 0 : i32
    %c0_i32_1 = arith.constant 0 : i32
    return %c0_i32, %c0_i32_0 : i32, i32
  }
  func.func @transform_3(%arg0: i32) -> (i32, i32) {
    %c0_i32 = arith.constant 0 : i32
    %c0_i32_0 = arith.constant 0 : i32
    %c0_i32_1 = arith.constant 0 : i32
    return %c0_i32, %c0_i32_0 : i32, i32
  }
  func.func @transform_4(%arg0: i32) -> (i32, i32) {
    %c0_i32 = arith.constant 0 : i32
    %c0_i32_0 = arith.constant 0 : i32
    return %arg0, %c0_i32 : i32, i32
  }
}

</mosaic_0001>

<bundles_post_ra>
// kernel: tpu_custom_call.1
= control target key start
LH: loop header
LB: loop body
LE: loop exit
PB: predicated region body
PF: predicated region fallthrough
CT: control target
= control target key end

     0   :  { %9 = vsyncpa [#allocation3], 0  ;;  %s3273_s0 = inlined_call_operand.hbm [shape: f32[16,11], index: 0, kind: input, shape index: {}]   ;;  %s3274_s1 = inlined_call_operand.hbm [shape: f32[11,352], index: 1, kind: input, shape index: {}]   ;;  %s3275_s2 = inlined_call_operand.hbm [shape: f32[12,352], index: 2, kind: input, shape index: {}]   ;;  %s3276_s3 = inlined_call_operand.vmem [shape: f32[1,352], index: 3, kind: input, shape index: {}]   ;;  %s3277_s4 = inlined_call_operand.hbm [shape: f32[16,352], index: 4, kind: output, shape index: {}]  }
   0x1   :  { %11 = vsyncpa [#allocation3 + $0x1], 0 }
   0x2   :  { %12 = vsyncpa [#allocation6], 0 }
   0x3   :  { %13 = vsyncpa [#allocation4], 0 }
   0x4   :  { %15 = vsyncpa [#allocation4 + $0x1], 0  ;;  %s2855_s15 = smov 0   ;;  %s2857_s16 = smov 0  }
   0x5   :  { %s2859_s17 = smov 0   ;;  %s2861_s18 = smov 0  }
   0x6 LB: > { %s2876_s19 = sadd.s32 4294967295, %s2816_s18   ;;  %s2334_s20 = sadd.s32 4294967294, %s2816_s18   ;;  %s2816_s18 = sphi %s2861_s18, %s3297_s18   ;;  %s2812_s17 = sphi %s2859_s17, %s3296_s17   ;;  %s2808_s16 = sphi %s2857_s16, %s3295_s16   ;;  %s2804_s15 = sphi %s2855_s15, %s3294_s15  }
   0x7   : > { %p41_p0 = scmp.ne.s32.totalorder %s2808_s16, %s2804_s15  ;;  %p3278_p1 = scmp.eq.s32.totalorder %s2876_s19, 0 }
   0x8   : > { %p134_p3 = scmp.eq.s32.totalorder %s2334_s20, 1  ;;  %p2335_p5 = scmp.ge.s32.totalorder %s2816_s18, 1 }
   0x9   : > { %p2885_p4 = por %p3278_p1, %p41_p0  ;;  %p141_p7 = scmp.lt.s32.totalorder %s2816_s18, 3 }
   0xa   : > { %p2890_p6 = por %p134_p3, %p41_p0  ;;  %s2818_s24 = smov [#allocation5]  }
   0xb   : > { %s3281_s21 = scalar_select %p2885_p4, 1, 0 }
   0xc   : > { %s3282_s22 = scalar_select %p2890_p6, 1, 0 }
   0xd   : > { %p2895_p8 = pnand %p2335_p5, %p141_p7  ;;  %s153_s25 = sshll.u32 %s2818_s24, 4  ;;  %s2899_s25 = int_to_ptr.vmem [resolvable:$true] %s153_s25 }
   0xe   : > { %s2819_s27 = smov [#allocation7]   ;;  %s2660_s5 = scalar_lea.hbm %s3274_s1, 768 }
   0xf   : > { %p2593_p9 = pneg %p2895_p8  ;;  %s166_s28 = sshll.u32 %s2819_s27, 4  ;;  %s2910_s28 = int_to_ptr.vmem [resolvable:$true] %s166_s28 }
  0x10   : > { %p2661_p12 = scmp.ne.s32.totalorder %s3274_s1, %s2660_s5  ;;  %p2667_p5 = scmp.lt.u32.totalorder %s2660_s5, %s3274_s1 }
  0x11   : > { %p2906_p11 = pnand %p2593_p9, %p3278_p1 }
  0x13   : > { %p2662_p13 = pneg %p2906_p11 }
  0x15   : > { %p2663_p0 = pnand %p2662_p13, %p2661_p12 }
  0x17   : > { %p2664_p3 = pneg %p2663_p0 }
  0x19   : > { %p2669_p7 = pnand %p2667_p5, %p2664_p3 }
  0x1b   : > { %2672 = shalt.err (!%p2669_p7)
}
  0x1c   : > { %s2673_s10 = scalar_lea.vmem %s2899_s25, 768  ;;  %p2681_p2 = scmp.lt.s32.totalorder %s2899_s25, %s2899_s25 }
  0x1d   : > { %p2674_p9 = scmp.ne.s32.totalorder %s2899_s25, %s2673_s10  ;;  %p2682_p12 = scmp.lt.s32.totalorder %s2673_s10, %s2673_s10 }
  0x1f   : > { %p2676_p10 = pnand %p2674_p9, %p2662_p13  ;;  %p2683_p0 = por %p2682_p12, %p2681_p2 }
  0x21   : > { %p2677_p1 = pneg %p2676_p10 }
  0x23   : > { %p2684_p6 = pnand %p2683_p0, %p2677_p1 }
  0x25   : > { %2687 = shalt.err (!%p2684_p6)
}
  0x26   : > { %s2820_s11 = smov 384   ;;  %s2821_s12 = smov 24  }
  0x27   : > { %2596 = dma.hbm_to_vmem [thread:$0]  (!%p2906_p11), %s3274_s1, 768, %s2899_s25, [#allocation6], %s2820_s11, %s2820_s11, %s2821_s12  }
  0x28   : > { %s2688_s27 = scalar_lea.hbm %s3275_s2, 768 }
  0x29   : > { %p2689_p2 = scmp.ne.s32.totalorder %s3275_s2, %s2688_s27  ;;  %p2695_p10 = scmp.lt.u32.totalorder %s2688_s27, %s3275_s2 }
  0x2b   : > { %p2691_p1 = pnand %p2689_p2, %p2662_p13 }
  0x2d   : > { %p2692_p6 = pneg %p2691_p1 }
  0x2f   : > { %p2697_p3 = pnand %p2695_p10, %p2692_p6 }
  0x31   : > { %2700 = shalt.err (!%p2697_p3)
}
  0x32   : > { %s2701_s25 = scalar_lea.vmem %s2910_s28, 768  ;;  %p2709_p12 = scmp.lt.s32.totalorder %s2910_s28, %s2910_s28 }
  0x33   : > { %p2702_p5 = scmp.ne.s32.totalorder %s2910_s28, %s2701_s25  ;;  %p2710_p0 = scmp.lt.s32.totalorder %s2701_s25, %s2701_s25 }
  0x35   : > { %p2704_p7 = pnand %p2702_p5, %p2662_p13  ;;  %p2711_p2 = por %p2710_p0, %p2709_p12 }
  0x37   : > { %p2705_p9 = pneg %p2704_p7 }
  0x39   : > { %p2712_p1 = pnand %p2711_p2, %p2705_p9 }
  0x3b   : > { %2715 = shalt.err (!%p2712_p1)
}
  0x3c   : > { %2599 = dma.hbm_to_vmem [thread:$0]  (!%p2906_p11), %s3275_s2, 768, %s2910_s28, [#allocation6], %s2820_s11, %s2820_s11, %s2821_s12  }
  0x3d   : > { %s2965_s9 = sadd.s32 1, %s2816_s18   ;;  %s28_s26 = sadd.s32 1, %s2812_s17 }
  0x3e   : > { %s25_s10 = ssub.s32 %s2816_s18, %s2965_s9  ;;  %p35_p13 = scmp.ne.s32.totalorder %s2812_s17, %s2808_s16 }
  0x3f   : > { %p26_p6 = scmp.eq.s32.totalorder %s25_s10, 0  ;;  %p36_p10 = scmp.eq.s32.totalorder %s2816_s18, 0 }
  0x40   : > { %p3285_p3 = scmp.eq.s32.totalorder %s2876_s19, 1  ;;  %p2610_p7 = scmp.lt.s32.totalorder %s2816_s18, 2 }
  0x41   : > { %s2981_s14 = scalar_select %p26_p6, %s2812_s17, %s28_s26  }
  0x42   : > { %p2975_p5 = por %p3285_p3, %p35_p13  ;;  %p37_p9 = por %p36_p10, %p35_p13 }
  0x43   : > { %s183_s20 = sand.u32 1, %s2812_s17   ;;  %s2340_s28 = sshll.u32 %s2816_s18, 7 }
  0x44   : > { %s3286_s13 = scalar_select %p2975_p5, 1, 0 }
  0x45   : > { %s2339_s24 = sshll.u32 %s183_s20, 3  ;;  %s2988_s27 = scalar_lea.hbm %s3273_s0, %s2340_s28 }
  0x46   : > { %s187_s29 = scalar_lea.vmem [#allocation2], %s2339_s24  ;;  %p2992_p11 = pnand %p2610_p7, %p37_p9 }
  0x47   : > { %s194_s30 = sshll.u32 %s187_s29, 4  ;;  %s184_s6 = scalar_lea.sflag [#allocation3], %s183_s20  ;;  %s2990_s30 = int_to_ptr.vmem [resolvable:$true] %s194_s30 }
  0x48   : > { %s2716_s25 = scalar_lea.hbm %s2988_s27, 128  ;;  %p2718_p0 = pneg %p2992_p11 }
  0x49   : > { %p2717_p12 = scmp.ne.s32.totalorder %s2988_s27, %s2716_s25  ;;  %s2721_s26 = scalar_lea.hbm %s3273_s0, 256 }
  0x4a   : > { %p2722_p13 = scmp.lt.u32.totalorder %s2988_s27, %s3273_s0  ;;  %p2723_p6 = scmp.lt.u32.totalorder %s2721_s26, %s2716_s25 }
  0x4b   : > { %p2719_p2 = pnand %p2718_p0, %p2717_p12  ;;  %p2725_p3 = scmp.lt.u32.totalorder %s2716_s25, %s2988_s27 }
  0x4c   : > { %p2724_p10 = por %p2723_p6, %p2722_p13 }
  0x4d   : > { %p2720_p1 = pneg %p2719_p2 }
  0x4e   : > { %p2726_p7 = por %p2725_p3, %p2724_p10 }
  0x50   : > { %p2727_p9 = pnand %p2726_p7, %p2720_p1 }
  0x52   : > { %2730 = shalt.err (!%p2727_p9)
}
  0x53   : > { %s2731_s20 = scalar_lea.vmem %s2990_s30, 128  ;;  %s2822_s28 = smov [#allocation2]  }
  0x54   : > { %p2732_p12 = scmp.ne.s32.totalorder %s2990_s30, %s2731_s20  ;;  %s2736_s11 = sshll.u32 %s2822_s28, 4  ;;  %s2737_s11 = int_to_ptr.vmem [resolvable:$false] %s2736_s11 }
  0x55   : > { %s2738_s12 = scalar_lea.vmem %s2737_s11, 256  ;;  %p2739_p4 = scmp.lt.s32.totalorder %s2990_s30, %s2737_s11 }
  0x56   : > { %p2734_p2 = pnand %p2732_p12, %p2718_p0  ;;  %p2740_p13 = scmp.lt.s32.totalorder %s2738_s12, %s2731_s20 }
  0x58   : > { %p2735_p5 = pneg %p2734_p2  ;;  %p2741_p6 = por %p2740_p13, %p2739_p4 }
  0x5a   : > { %p2742_p10 = pnand %p2741_p6, %p2735_p5 }
  0x5c   : > { %2745 = shalt.err (!%p2742_p10)
}
  0x5d   : > { %2603 = dma.hbm_to_vmem [thread:$0]  (!%p2992_p11), %s2988_s27, 128, %s2990_s30, %s184_s6  }
  0x5e   : > { %203 = sbr.rel (%p2895_p8) target bundleno = 577 (0x241), region = 36  ;;  %s3024_s29 = sand.u32 (!%p2895_p8), 1, %s2808_s16  }
  0x5f   : > { %s2342_s25 = sshll.u32 (!%p2895_p8), %s3024_s29, 3  ;;  %s206_s7 = scalar_lea.sflag (!%p2895_p8), [#allocation3], %s3024_s29 }
  0x60   : > { %s209_s8 = scalar_lea.vmem (!%p2895_p8), [#allocation2], %s2342_s25  ;;  %p3288_p4 = scmp.ne.s32.totalorder (!%p2895_p8), %s3281_s21, 0 }
  0x65   : > { %2791 = dma.done.wait (%p3288_p4), %s206_s7, 128  }
  0x66   : > { %2793 = vsyncadd (%p3288_p4), %s206_s7, 4294967168  ;;  %p3289_p5 = scmp.eq.s32.totalorder %s2876_s19, 0 }
  0x68   : > { %2795 = dma.done.wait (%p3289_p5), [#allocation6], 1536   ;;  %p3290_p11 = pmov %p3289_p5 }
  0x69   : > { %v2823_v0 = vmov 8   ;;  %v2824_v1 = vmov 10   ;;  %v2825_v2 = vmov 0.0   ;;  %v3037_v3 = vld [vmem:[%s209_s8] sm:$0xff]  ;;  %v2826_v6 = vmov 9   ;;  %v274_v8 = vld [vmem:[#allocation7 + $0x10] sm:$0xff] }
  0x6a   : > { %2797 = vsyncadd (%p3290_p11), [#allocation6], 4294965760  ;;  %2656 = vset.pattern.permute.xlu0 %v2823_v0  ;;  %2658 = vset.pattern.permute.xlu1 %v2824_v1  ;;  %v2578_v4 = vtrunc.f32 %v3037_v3  ;;  %vm282_vm0 = vcmask 1043456   ;;  %v277_v7 = vld [vmem:[#allocation7 + $0x28] sm:$0xf]  ;;  %v784_v10 = vand.u32 4294901760, %v274_v8  ;;  %v250_v59 = vlaneseq }
  0x6b   : > { %360 = vmatprep.mubr.f32.mxu0 %v2825_v2  ;;  %v290_v9 = vsel %vm282_vm0, %v277_v7, 0  ;;  %v276_v12 = vld [vmem:[#allocation7 + $0x20] sm:$0xf]  ;;  %v273_v13 = vld [vmem:[#allocation7 + $0x8] sm:$0xff]  ;;  %v275_v15 = vld [vmem:[#allocation7 + $0x18] sm:$0xf] }
  0x6c   : > { %v2579_v5 = vcvt.f32.s32 %v2578_v4  ;;  %v787_v11 = vand.u32 4294901760, %v290_v9  ;;  %v287_v14 = vsel %vm282_vm0, %v276_v12, 0  ;;  %v3042_v16 = vsub.f32 %v274_v8, %v784_v10  ;;  %v272_v20 = vld [vmem:[#allocation7] sm:$0xff]  ;;  %s2577_s27 = smul.u32 24, %s3024_s29  ;;  %s2231_s20 = scalar_lea.sflag [#allocation4], %s3024_s29 }
  0x6d   : > { %v292_v18 = vand.u32 4294901760, %v273_v13  ;;  %v296_v19 = vand.u32 4294901760, %v287_v14  ;;  %v284_v21 = vsel %vm282_vm0, %v275_v15, 0  ;;  %v294_v22 = vand.u32 4294901760, %v272_v20  ;;  %s2580_s5 = smul.u32 384, %s2876_s19  ;;  %p3291_p0 = scmp.ne.s32.totalorder %s3286_s13, 0 }
  0x6e   : > { %253 = vperm.xlu0 %2656, %v2579_v5   ;;  %266 = vperm.xlu1 %2658, %v2579_v5   ;;  %v3044_v17 = vsub.f32 %v290_v9, %v787_v11  ;;  %v298_v23 = vand.u32 4294901760, %v284_v21  ;;  %v2827_v24 = vmov 0.0|0.0   ;;  %v3048_v25 = vpack.c.bf16 %v787_v11, %v784_v10  ;;  %v248_v11 = vld [vmem:[#allocation5 + $0x28] sm:$0x7]  ;;  %s241_s30 = scalar_lea.vmem [#allocation8], %s2577_s27  ;;  %s2829_s19 = smov [#allocation8]  }
  0x6f   : > { %2495 = vmatprep.subr.bf16.mxu1 %v2827_v24  ;;  %v3050_v26 = vpack.c.bf16 %v296_v19, %v292_v18  ;;  %v3052_v27 = vsub.f32 %v273_v13, %v292_v18  ;;  %v3054_v28 = vsub.f32 %v287_v14, %v296_v19  ;;  %vm2828_vm1 = vmmov 0   ;;  %v245_v14 = vld [vmem:[#allocation5 + $0x10] sm:$0xff]  ;;  %s2245_s6 = sshll.u32 %s241_s30, 4  ;;  %s3229_s24 = scalar_lea.hbm %s3277_s4, %s2580_s5  ;;  %s3231_s6 = int_to_ptr.vmem [resolvable:$true] %s2245_s6 }
  0x70   : > { %2391 = vmatprep.mubr.msk.f32.mxu1 %vm2828_vm1, %v2825_v2  ;;  %v863_v29 = vand.u32 4294901760, %v3042_v16  ;;  %v3059_v30 = vpack.c.bf16 %v298_v23, %v294_v22  ;;  %v3061_v31 = vsub.f32 %v272_v20, %v294_v22  ;;  %v3063_v32 = vsub.f32 %v284_v21, %v298_v23  ;;  %2497 = vmatpush3.bf16.msra.mxu1 %v3048_v25  ;;  %s2746_s28 = scalar_lea.vmem %s3231_s6, 384  ;;  %s2750_s11 = sshll.u32 %s2829_s19, 4  ;;  %s2751_s11 = int_to_ptr.vmem [resolvable:$false] %s2750_s11 }
  0x71   : > { %v870_v33 = vand.u32 4294901760, %v3044_v17  ;;  %2472 = vmatprep.subr.bf16.mxu0 %v3050_v26  ;;  %v374_v34 = vand.u32 4294901760, %v3052_v27  ;;  %v386_v35 = vand.u32 4294901760, %v3054_v28  ;;  %2498 = vmatprep.subr.bf16.mxu1 %v2827_v24  ;;  %v2502_v53 = vpack.c.bf16 %v3044_v17, %v3042_v16  ;;  %p2747_p8 = scmp.ne.s32.totalorder %s3231_s6, %s2746_s28  ;;  %s2752_s12 = scalar_lea.vmem %s2751_s11, 768 }
  0x72   : > { %2657 = vset.pattern.permute.xlu0 %v2826_v6  ;;  %v864_v36 = vsub.f32 %v3042_v16, %v863_v29  ;;  %2474 = vmatpush1.bf16.msra.mxu0 %v3059_v30  ;;  %v380_v37 = vand.u32 4294901760, %v3061_v31  ;;  %v392_v38 = vand.u32 4294901760, %v3063_v32  ;;  %v2479_v54 = vpack.c.bf16 %v3054_v28, %v3052_v27  ;;  %p2753_p7 = scmp.lt.s32.totalorder %s3231_s6, %s2751_s11  ;;  %p2754_p9 = scmp.lt.s32.totalorder %s2752_s12, %s2746_s28 }
  0x73   : > { %259 = vperm.xlu0 %2657, %v2579_v5   ;;  %v871_v39 = vsub.f32 %v3044_v17, %v870_v33  ;;  %v375_v40 = vsub.f32 %v3052_v27, %v374_v34  ;;  %v387_v41 = vsub.f32 %v3054_v28, %v386_v35  ;;  %v2481_v55 = vpack.c.bf16 %v3063_v32, %v3061_v31  ;;  %p2748_p1 = pnand %p2747_p8, %p3291_p0 }
  0x74   : > { %v865_v42 = vand.u32 4294901760, %v864_v36  ;;  %v381_v43 = vsub.f32 %v3061_v31, %v380_v37  ;;  %v393_v44 = vsub.f32 %v3063_v32, %v392_v38  ;;  %v2508_v56 = vpack.c.bf16 %v870_v33, %v863_v29  ;;  %v247_v31 = vld [vmem:[#allocation5 + $0x20] sm:$0x7]  ;;  %v244_v33 = vld [vmem:[#allocation5 + $0x8] sm:$0xff]  ;;  %p2755_p12 = por %p2754_p9, %p2753_p7 }
  0x75   : > { %v872_v45 = vand.u32 4294901760, %v871_v39  ;;  %v376_v46 = vand.u32 4294901760, %v375_v40  ;;  %v388_v47 = vand.u32 4294901760, %v387_v41  ;;  %v3086_v57 = vpack.c.bf16 %v386_v35, %v374_v34  ;;  %v246_v40 = vld [vmem:[#allocation5 + $0x18] sm:$0x7]  ;;  %p2749_p3 = pneg %p2748_p1 }
  0x76   : > { %v382_v48 = vand.u32 4294901760, %v381_v43  ;;  %v394_v49 = vand.u32 4294901760, %v393_v44  ;;  %v3088_v58 = vpack.c.bf16 %v392_v38, %v380_v37  ;;  %v251_v60 = vand.u32 127, %v250_v59 }
  0x77   : > { %2659 = vset.pattern.permute.xlu0 %v2824_v1  ;;  %v2499_v50 = vpack.c.bf16 %v872_v45, %v865_v42  ;;  %v2475_v51 = vpack.c.bf16 %v388_v47, %v376_v46  ;;  %vm278_vm5 = vcmask 97280   ;;  %vm1246_vm6 = vcmask 1042432   ;;  %v243_v42 = vld [vmem:[#allocation5] sm:$0xff]  ;;  %p2756_p2 = pnand %p2755_p12, %p2749_p3 }
  0x78   : > { %v2477_v52 = vpack.c.bf16 %v394_v49, %v382_v48  ;;  %vm1242_vm7 = vcmask 89088   ;;  %v1254_v15 = vsel %vm1246_vm6, %v248_v11, 0  ;;  %v1748_v17 = vand.u32 4294901760, %v245_v14 }
  0x79   : > { %2476 = vmatprep.subr.bf16.mxu0 %v2475_v51  ;;  %v1244_v16 = vsel %vm1242_vm7, %v3037_v3, 0  ;;  %v1751_v18 = vand.u32 4294901760, %v1254_v15  ;;  %v1251_v34 = vsel %vm1246_vm6, %v247_v31, 0  ;;  %v1256_v38 = vand.u32 4294901760, %v244_v33 }
  0x7a   : > { %v3106_v19 = vand.u32 4294901760, %v1244_v16  ;;  %v3111_v3 = vsub.f32 %v245_v14, %v1748_v17  ;;  %v1260_v39 = vand.u32 4294901760, %v1251_v34  ;;  %v1248_v43 = vsel %vm1246_vm6, %v246_v40, 0 }
  0x7b   : > { %v3113_v20 = vsub.f32 %v1254_v15, %v1751_v18  ;;  %v3147_v35 = vpack.c.bf16 %v1751_v18, %v1748_v17  ;;  %v3162_v44 = vsub.f32 %v244_v33, %v1256_v38  ;;  %v1258_v47 = vand.u32 4294901760, %v243_v42 }
  0x7c   : > { %v3117_v21 = vsub.f32 %v1244_v16, %v3106_v19  ;;  %v1827_v22 = vand.u32 4294901760, %v3111_v3  ;;  %v3164_v45 = vsub.f32 %v1251_v34, %v1260_v39  ;;  %v1262_v48 = vand.u32 4294901760, %v1248_v43 }
  0x7d   : > { %v1834_v23 = vand.u32 4294901760, %v3113_v20  ;;  %v2544_v46 = vpack.c.bf16 %v3113_v20, %v3111_v3  ;;  %v1338_v49 = vand.u32 4294901760, %v3162_v44  ;;  %v1343_v51 = vsub.f32 %v243_v42, %v1258_v47 }
  0x7e   : > { %v3130_v27 = vand.u32 4294901760, %v3117_v21  ;;  %v1828_v28 = vsub.f32 %v3111_v3, %v1827_v22  ;;  %vm2228_vm8 = vcmask 785408  }
  0x7f   : > { %v1835_v29 = vsub.f32 %v3113_v20, %v1834_v23 }
  0x80   : > { %v1328_v32 = vsub.f32 %v3117_v21, %v3130_v27  ;;  %v1829_v36 = vand.u32 4294901760, %v1828_v28 }
  0x81   : > { %v1836_v37 = vand.u32 4294901760, %v1835_v29 }
  0x82   : > { %v3155_v41 = vand.u32 4294901760, %v1328_v32 }
  0xed   : > { %v254_v61 = vpop.permute.xlu0 %253  ;;  %v267_v62 = vpop.permute.xlu1 %266 }
  0xee   : > { %vm255_vm2 = vcmp.eq.s32.totalorder %v251_v60, %v254_v61  ;;  %vm268_vm3 = vcmp.eq.s32.totalorder %v251_v60, %v267_v62 }
  0xef   : > { %v2345_v0 = vsel %vm255_vm2, 1.0, %v2825_v2  ;;  %v2347_v4 = vsel %vm268_vm3, 1.0, %v2825_v2 }
  0xf2   : > { %v260_v63 = vpop.permute.xlu0 %259 }
  0xf3   : > { %vm261_vm4 = vcmp.eq.s32.totalorder %v251_v60, %v260_v63 }
  0xf4   : > { %v2346_v1 = vsel %vm261_vm4, 1.0, %v2825_v2 }
  0xf5   : > { %v264_v5 = vadd.f32 %v2346_v1, %v2345_v0 }
  0xf7   : > { %v271_v6 = vadd.f32 %v2347_v4, %v264_v5 }
  0xf9   : > { %v280_v7 = vsel %vm278_vm5, %v271_v6, 0 }
  0xfa   : > { %v3094_v8 = vand.u32 4294901760, %v280_v7 }
  0xfc   : > { %v362_v9 = vsub.f32 %v280_v7, %v3094_v8 }
  0xfe   : > { %v3097_v10 = vand.u32 4294901760, %v362_v9 }
 0x100   : > { %v364_v12 = vsub.f32 %v362_v9, %v3097_v10 }
 0x102   : > { %v365_v13 = vand.u32 4294901760, %v364_v12 }
 0x104   : > { %366 = vmatmul.mubr.f32.vlgmr.msra.gmra.mrb[0].mxu0 %v365_v13  ;;  %2392 = vmatmul.mubr.f32.vlgmr.msra.gmra.mrb[0].mxu1 %v365_v13 }
 0x105   : > { %2478 = vmatpush1.bf16.msra.mxu0 %v2477_v52  ;;  %2500 = vmatpush3.bf16.msra.mxu1 %v2499_v50  ;;  %v1350_v50 = vand.u32 4294901760, %v3164_v45  ;;  %v1355_v52 = vsub.f32 %v1248_v43, %v1262_v48 }
 0x106   : > { %2398 = vmatprep.mubr.msk.f32.mxu1 %vm2828_vm1, %v2825_v2  ;;  %2501 = vmatprep.subr.bf16.mxu1 %v2827_v24 }
 0x107   : > { %456 = vmatprep.mubr.f32.mxu0 %v2825_v2  ;;  %2480 = vmatprep.subr.bf16.mxu0 %v2479_v54  ;;  %v1339_v54 = vsub.f32 %v3162_v44, %v1338_v49  ;;  %v2523_v5 = vpack.c.bf16 %v1355_v52, %v1343_v51  ;;  %v2529_v6 = vpack.c.bf16 %v1350_v50, %v1338_v49 }
 0x108   : > { %2399 = vmatmul.mubr.f32.vlgmr.msra.gmra.mrb[2].mxu1 %v3094_v8 }
 0x109   : > { %2503 = vmatpush3.bf16.msra.mxu1 %v2502_v53  ;;  %2405 = vmatprep.mubr.msk.f32.mxu1 %vm2828_vm1, %v2825_v2  ;;  %v2513_v53 = vpack.c.bf16 %v1260_v39, %v1256_v38 }
 0x10a   : > { %2504 = vmatprep.subr.bf16.mxu1 %v2827_v24 }
 0x10c   : > { %458 = vmatmul.mubr.f32.vlgmr.msra.gmra.mrb[0].mxu0 %v3094_v8  ;;  %2406 = vmatmul.mubr.f32.vlgmr.msra.gmra.mrb[4].mxu1 %v362_v9 }
 0x10d   : > { %2482 = vmatpush1.bf16.msra.mxu0 %v2481_v55  ;;  %2506 = vmatpush3.bf16.msra.mxu1 %v3048_v25  ;;  %v1351_v55 = vsub.f32 %v3164_v45, %v1350_v50 }
 0x10e   : > { %2412 = vmatprep.mubr.msk.f32.mxu1 %vm2828_vm1, %v2825_v2  ;;  %2507 = vmatprep.subr.bf16.mxu1 %v2827_v24 }
 0x10f   : > { %536 = vmatprep.mubr.f32.mxu0 %v2825_v2  ;;  %2484 = vmatprep.subr.bf16.mxu0 %v3050_v26  ;;  %v1352_v60 = vand.u32 4294901760, %v1351_v55 }
 0x110   : > { %2413 = vmatmul.mubr.f32.vlgmr.msra.gmra.mrb[6].mxu1 %v3097_v10 }
 0x111   : > { %2509 = vmatpush3.bf16.msra.mxu1 %v2508_v56  ;;  %2419 = vmatprep.mubr.msk.f32.mxu1 %vm2828_vm1, %v2825_v2  ;;  %v1344_v56 = vand.u32 4294901760, %v1343_v51 }
 0x112   : > { %2510 = vmatprep.subr.bf16.mxu1 %v2827_v24 }
 0x113   : > { %v1345_v61 = vsub.f32 %v1343_v51, %v1344_v56 }
 0x114   : > { %539 = vmatmul.mubr.f32.vlgmr.msra.gmra.mrb[0].mxu0 %v362_v9  ;;  %2420 = vmatmul.mubr.f32.vlgmr.msra.gmra.mrb[8].mxu1 %v3094_v8 }
 0x115   : > { %2486 = vmatpush1.bf16.msra.mxu0 %v3059_v30  ;;  %2512 = vmatpush3.bf16.msra.mxu1 %v3048_v25  ;;  %v2541_v25 = vpack.c.bf16 %v1836_v37, %v1829_v36  ;;  %v1346_v0 = vand.u32 4294901760, %v1345_v61  ;;  %v2209_v36 = vshrl.u32 %v250_v59, 7 }
 0x116   : > { %2426 = vmatprep.mubr.msk.f32.mxu1 %vm2828_vm1, %v2825_v2  ;;  %2537 = vmatprep.subr.bf16.mxu1 %v2827_v24 }
 0x117   : > { %613 = vmatprep.mubr.f32.mxu0 %v2825_v2  ;;  %2488 = vmatprep.subr.bf16.mxu0 %v3086_v57  ;;  %v1356_v57 = vand.u32 4294901760, %v1355_v52  ;;  %v2218_v40 = vsub.s32 2, %v2209_v36  ;;  %v2210_v59 = vsub.s32 0, %v2209_v36  ;;  %v2214_v49 = vsub.s32 1, %v2209_v36 }
 0x118   : > { %2427 = vmatmul.mubr.f32.vlgmr.msra.gmra.mrb[10].mxu1 %v3094_v8 }
 0x119   : > { %2539 = vmatpush3.bf16.msra.mxu1 %v3147_v35  ;;  %2433 = vmatprep.mubr.msk.f32.mxu1 %vm2828_vm1, %v2825_v2  ;;  %v1357_v62 = vsub.f32 %v1355_v52, %v1356_v57  ;;  %v2531_v7 = vpack.c.bf16 %v1356_v57, %v1344_v56 }
 0x11a   : > { %2540 = vmatprep.subr.bf16.mxu1 %v2827_v24 }
 0x11b   : > { %v1358_v1 = vand.u32 4294901760, %v1357_v62 }
 0x11c   : > { %617 = vmatmul.mubr.f32.vlgmr.msra.gmra.mrb[0].mxu0 %v3097_v10  ;;  %2434 = vmatmul.mubr.f32.vlgmr.msra.gmra.mrb[12].mxu1 %v3155_v41 }
 0x11d   : > { %2490 = vmatpush1.bf16.msra.mxu0 %v3088_v58  ;;  %2542 = vmatpush3.bf16.msra.mxu1 %v2541_v25  ;;  %v1340_v58 = vand.u32 4294901760, %v1339_v54  ;;  %v2519_v4 = vpack.c.bf16 %v1358_v1, %v1346_v0  ;;  %v2206_v25 = vld [vmem:[%s3276_s3] sm:$0x7] }
 0x11e   : > { %2440 = vmatprep.mubr.msk.f32.mxu1 %vm2828_vm1, %v2825_v2  ;;  %2543 = vmatprep.subr.bf16.mxu1 %v2827_v24  ;;  %v2211_v50 = vrot.slane %v2206_v25, %v2210_v59  ;;  %v2215_v51 = vrot.slane %v2206_v25, %v2214_v49 }
 0x11f   : > { %699 = vmatprep.mubr.f32.mxu0 %v2825_v2  ;;  %2492 = vmatprep.subr.bf16.mxu0 %v3050_v26  ;;  %v2550_v26 = vpack.c.bf16 %v1834_v23, %v1827_v22  ;;  %v2517_v63 = vpack.c.bf16 %v1352_v60, %v1340_v58 }
 0x120   : > { %2441 = vmatmul.mubr.f32.vlgmr.msra.gmra.mrb[14].mxu1 %v3106_v19 }
 0x121   : > { %2545 = vmatpush3.bf16.msra.mxu1 %v2544_v46  ;;  %2447 = vmatprep.mubr.msk.f32.mxu1 %vm2828_vm1, %v2825_v2 }
 0x122   : > { %2546 = vmatprep.subr.bf16.mxu1 %v2827_v24 }
 0x124   : > { %701 = vmatmul.mubr.f32.vlgmr.msra.gmra.mrb[0].mxu0 %v3094_v8  ;;  %2448 = vmatmul.mubr.f32.vlgmr.msra.gmra.mrb[16].mxu1 %v3117_v21 }
 0x125   : > { %2494 = vmatpush1.bf16.msra.mxu0 %v3059_v30  ;;  %2548 = vmatpush3.bf16.msra.mxu1 %v3147_v35  ;;  %v2515_v30 = vpack.c.bf16 %v1262_v48, %v1258_v47 }
 0x126   : > { %2454 = vmatprep.mubr.msk.f32.mxu1 %vm2828_vm1, %v2825_v2  ;;  %2549 = vmatprep.subr.bf16.mxu1 %v2827_v24 }
 0x127   : > { %775 = vmatprep.mubr.f32.mxu0 %v2825_v2  ;;  %2514 = vmatprep.subr.bf16.mxu0 %v2513_v53 }
 0x128   : > { %2455 = vmatmul.mubr.f32.vlgmr.msra.gmra.mrb[18].mxu1 %v3130_v27 }
 0x129   : > { %2551 = vmatpush3.bf16.msra.mxu1 %v2550_v26  ;;  %2461 = vmatprep.mubr.msk.f32.mxu1 %vm2828_vm1, %v2825_v2 }
 0x12a   : > { %2552 = vmatprep.subr.bf16.mxu1 %v2827_v24  ;;  %v2521_v24 = vpack.c.bf16 %v3164_v45, %v3162_v44  ;;  %v2219_v44 = vrot.slane %v2206_v25, %v2218_v40 }
 0x12c   : > { %777 = vmatmul.mubr.f32.vlgmr.msra.gmra.mrb[0].mxu0 %v3094_v8  ;;  %2462 = vmatmul.mubr.f32.vlgmr.msra.gmra.mrb[20].mxu1 %v3106_v19 }
 0x12d   : > { %2516 = vmatpush1.bf16.msra.mxu0 %v2515_v30  ;;  %2554 = vmatpush3.bf16.msra.mxu1 %v3147_v35 }
 0x12e   : > { %2468 = vmatprep.mubr.msk.f32.mxu1 %vm2828_vm1, %v2825_v2  ;;  %1324 = vmatprep.mubr.f32.mxu0 %v2825_v2 }
 0x12f   : > { %2518 = vmatprep.subr.bf16.mxu0 %v2517_v63 }
 0x130   : > { %2469 = vmatmul.mubr.f32.vlgmr.msra.gmra.mrb[22].mxu1 %v3106_v19 }
 0x134   : > { %1330 = vmatmul.mubr.f32.vlgmr.msra.gmra.mrb[0].mxu0 %v3155_v41 }
 0x135   : > { %2520 = vmatpush1.bf16.msra.mxu0 %v2519_v4  ;;  %1420 = vmatprep.mubr.f32.mxu0 %v2825_v2 }
 0x136   : > { %2522 = vmatprep.subr.bf16.mxu0 %v2521_v24 }
 0x13c   : > { %1422 = vmatmul.mubr.f32.vlgmr.msra.gmra.mrb[0].mxu0 %v3106_v19 }
 0x13d   : > { %2524 = vmatpush1.bf16.msra.mxu0 %v2523_v5  ;;  %1500 = vmatprep.mubr.f32.mxu0 %v2825_v2 }
 0x13e   : > { %2526 = vmatprep.subr.bf16.mxu0 %v2513_v53 }
 0x144   : > { %1503 = vmatmul.mubr.f32.vlgmr.msra.gmra.mrb[0].mxu0 %v3117_v21 }
 0x145   : > { %2528 = vmatpush1.bf16.msra.mxu0 %v2515_v30  ;;  %1577 = vmatprep.mubr.f32.mxu0 %v2825_v2 }
 0x146   : > { %2530 = vmatprep.subr.bf16.mxu0 %v2529_v6 }
 0x14c   : > { %1581 = vmatmul.mubr.f32.vlgmr.msra.gmra.mrb[0].mxu0 %v3130_v27 }
 0x14d   : > { %2532 = vmatpush1.bf16.msra.mxu0 %v2531_v7  ;;  %1663 = vmatprep.mubr.f32.mxu0 %v2825_v2 }
 0x14e   : > { %2534 = vmatprep.subr.bf16.mxu0 %v2513_v53 }
 0x154   : > { %1665 = vmatmul.mubr.f32.vlgmr.msra.gmra.mrb[0].mxu0 %v3106_v19 }
 0x155   : > { %2536 = vmatpush1.bf16.msra.mxu0 %v2515_v30  ;;  %1739 = vmatprep.mubr.f32.mxu0 %v2825_v2 }
 0x15c   : > { %1741 = vmatmul.mubr.f32.vlgmr.msra.gmra.mrb[0].mxu0 %v3106_v19 }
 0x1d7   : > { %v856_v8 = vpop.f32.mrb[0].mxu1 }
 0x1d8   : > { %v2393_v9 = vpop.f32.mrb[1].mxu1 }
 0x1db   : > { %v937_v10 = vpop.f32.mrb[2].mxu1 }
 0x1dc   : > { %v938_v11 = vadd.f32 %v937_v10, %v856_v8  ;;  %v2400_v12 = vpop.f32.mrb[3].mxu1 }
 0x1df   : > { %v1013_v13 = vpop.f32.mrb[4].mxu1 }
 0x1e0   : > { %v1014_v14 = vadd.f32 %v1013_v13, %v938_v11  ;;  %v2407_v15 = vpop.f32.mrb[5].mxu1 }
 0x1e3   : > { %v1088_v16 = vpop.f32.mrb[6].mxu1 }
 0x1e4   : > { %v1089_v17 = vadd.f32 %v1088_v16, %v1014_v14  ;;  %v2414_v18 = vpop.f32.mrb[7].mxu1 }
 0x1e7   : > { %v1165_v3 = vpop.f32.mrb[8].mxu1 }
 0x1e8   : > { %v1166_v20 = vadd.f32 %v1165_v3, %v1089_v17  ;;  %v2421_v21 = vpop.f32.mrb[9].mxu1 }
 0x1eb   : > { %v1238_v22 = vpop.f32.mrb[10].mxu1 }
 0x1ec   : > { %v1239_v23 = vadd.f32 %v1238_v22, %v1166_v20  ;;  %v2428_v27 = vpop.f32.mrb[11].mxu1 }
 0x1ef   : > { %v1820_v2 = vpop.f32.mrb[12].mxu1 }
 0x1f0   : > { %v1821_v28 = vadd.f32 %v1820_v2, %v1239_v23  ;;  %v2435_v19 = vpop.f32.mrb[13].mxu1 }
 0x1f3   : > { %v1901_v29 = vpop.f32.mrb[14].mxu1 }
 0x1f4   : > { %v1902_v31 = vadd.f32 %v1901_v29, %v1821_v28  ;;  %v2442_v32 = vpop.f32.mrb[15].mxu1 }
 0x1f7   : > { %v1977_v33 = vpop.f32.mrb[16].mxu1 }
 0x1f8   : > { %v1978_v34 = vadd.f32 %v1977_v33, %v1902_v31  ;;  %v2449_v35 = vpop.f32.mrb[17].mxu1 }
 0x1fb   : > { %v2052_v37 = vpop.f32.mrb[18].mxu1 }
 0x1fc   : > { %v2053_v38 = vadd.f32 %v2052_v37, %v1978_v34  ;;  %v2456_v39 = vpop.f32.mrb[19].mxu1 }
 0x1ff   : > { %v2129_v41 = vpop.f32.mrb[20].mxu1 }
 0x200   : > { %v2130_v42 = vadd.f32 %v2129_v41, %v2053_v38  ;;  %v2463_v43 = vpop.f32.mrb[21].mxu1 }
 0x203   : > { %v2202_v45 = vpop.f32.mrb[22].mxu1 }
 0x204   : > { %v2203_v46 = vadd.f32 %v2202_v45, %v2130_v42  ;;  %v2470_v47 = vpop.f32.mrb[23].mxu1 }
 0x206   : > { %v2225_v48 = vadd.f32 %v2219_v44, %v2203_v46 }
 0x208   : > { %2229 = vst.msk [vmem:[%s241_s30 + $0x10] sm:$0xff] %vm2228_vm8, %v2225_v48 }
 0x22f   : > { %v1742_v52 = vpop.f32.mrb[0].mxu0 }
 0x230   : > { %v2223_v53 = vadd.f32 %v2211_v50, %v1742_v52  ;;  %v1744_v54 = vpop.f32.mrb[1].mxu0 }
 0x231   : > { %v2224_v55 = vadd.f32 %v2215_v51, %v1744_v54 }
 0x232   : > { %2226 = vst [vmem:[%s241_s30] sm:$0xff] %v2223_v53 }
 0x233   : > { %2227 = vst [vmem:[%s241_s30 + $0x8] sm:$0xff] %v2224_v55 }
 0x234   : > { %2759 = shalt.err (!%p2756_p2)
}
 0x235   : > { %s2760_s29 = scalar_lea.hbm %s3229_s24, 384  ;;  %s2764_s8 = scalar_lea.hbm %s3277_s4, 768 }
 0x236   : > { %p2761_p13 = scmp.ne.s32.totalorder %s3229_s24, %s2760_s29  ;;  %p2765_p4 = scmp.lt.u32.totalorder %s3229_s24, %s3277_s4 }
 0x237   : > { %p2766_p5 = scmp.lt.u32.totalorder %s2764_s8, %s2760_s29  ;;  %p2768_p8 = scmp.lt.u32.totalorder %s2760_s29, %s3229_s24 }
 0x238   : > { %p2762_p6 = pnand %p2761_p13, %p3291_p0 }
 0x239   : > { %p2767_p11 = por %p2766_p5, %p2765_p4 }
 0x23a   : > { %p2763_p10 = pneg %p2762_p6 }
 0x23b   : > { %p2769_p1 = por %p2768_p8, %p2767_p11 }
 0x23d   : > { %p2770_p3 = pnand %p2769_p1, %p2763_p10 }
 0x23f   : > { %2773 = shalt.err (!%p2770_p3)
}
 0x240   : > { %2591 = dma.vmem_to_hbm [thread:$0]  (%p3291_p0), %s3231_s6, 384, %s3229_s24, %s2231_s20  }
 0x241 PF: > { %s2257_s27 = sand.u32 1, %s2804_s15   ;;  %p3292_p7 = scmp.ne.s32.totalorder %s3282_s22, 0 }
 0x242   : > { %p3293_p9 = scmp.ge.s32.totalorder %s2816_s18, 2  ;;  %s2258_s30 = scalar_lea.sflag [#allocation4], %s2257_s27 }
 0x244   : > { %p2605_p12 = pnand %p3293_p9, %p3292_p7 }
 0x246   : > { %2799 = dma.done.wait (!%p2605_p12), %s2258_s30, 384  }
 0x247   : > { %2801 = vsyncadd (!%p2605_p12), %s2258_s30, 4294966912  ;;  %p18_p2 = scmp.ge.s32.totalorder %s2965_s9, 4   ;;  %s3294_s15 = smov %s2808_s16 }
 0x248   : > { %s3295_s16 = smov %s2812_s17  ;;  %s3296_s17 = smov %s2981_s14 }
 0x249   : > { %s3297_s18 = smov %s2965_s9  ;;  %20 = sbr.rel (!%p18_p2) target bundleno = 6 (0x6), region = 89 }
 0x250   :  { %2263 = vsyncpa [#allocation3], 1 }
 0x251   :  { %2265 = vsyncpa [#allocation3 + $0x1], 1 }
 0x252   :  { %2266 = vsyncpa [#allocation6], 1 }
 0x253   :  { %2267 = vsyncpa [#allocation4], 1 }
 0x254   :  { %2269 = vsyncpa [#allocation4 + $0x1], 1 }

</bundles_post_ra>
